<compile_context>
chip_gen: v6e
topology: v6e:2x2x1
jax: 0.10.0
libtpu: 0.0.40
codegen_flags: <defaults>
</compile_context>

<pallas_src>
import math
import functools

import jax
import jax.numpy as jnp
from jax import lax
from jax.experimental import pallas as pl
from jax.experimental.pallas import tpu as pltpu


# ---------------------------------------------------------------------------
# Fused Pallas kernel (one grid step == one batch element)
# ---------------------------------------------------------------------------
def _mha_fused_kernel(q_ref, k_ref, v_ref,
                      wq_ref, bq_ref, wk_ref, bk_ref, wv_ref, bv_ref,
                      wo_ref, bo_ref,
                      o_ref, *p_refs, H, d_k):
    """Fused MHA forward for one batch element.

    q_ref/k_ref/v_ref/o_ref are (S, E) VMEM blocks (batch dim squeezed by BlockSpec).
    Weights arrive pre-transposed to (E_in, E_out) with 1/sqrt(d_k) pre-folded into
    wq/bq, so every matmul is a plain dot_general with no in-kernel transpose or scale.
    If p_refs is non-empty, p_refs[0] is the (H, S, S) attention-prob output block.
    """
    f32 = jnp.float32
    S, E = q_ref.shape
    nt = (((1,), (0,)), ((), ()))          # (S, Ein) @ (Ein, Eout) -> (S, Eout)

    def proj(x_ref, w_ref, b_ref):
        y = lax.dot_general(x_ref[...], w_ref[...], nt, preferred_element_type=f32)
        return y + b_ref[...]

    q = proj(q_ref, wq_ref, bq_ref)        # (S, E) f32 (scale already folded in)
    k = proj(k_ref, wk_ref, bk_ref)
    v = proj(v_ref, wv_ref, bv_ref)

    # One reshuffle to head-major (H, S, d_k); all heads then run as single batched
    # MXU matmuls (no per-head lane slicing, no per-head MXU push/drain).
    def to_heads(x):
        return jnp.transpose(x.reshape(S, H, d_k), (1, 0, 2))

    qh, kh, vh = to_heads(q), to_heads(k), to_heads(v)

    # scores[h, i, j] = sum_d qh[h,i,d] * kh[h,j,d]   (contract d_k directly, no .T)
    s = jnp.einsum('hqd,hkd->hqk', qh, kh, preferred_element_type=f32)   # (H, S, S)

    m = jnp.max(s, axis=-1, keepdims=True)
    e = jnp.exp(s - m)
    denom = jnp.sum(e, axis=-1, keepdims=True)
    p = e * pl.reciprocal(denom, approx=False)                           # exact softmax

    # out_h[h, i, d] = sum_j p[h,i,j] * vh[h,j,d]
    ho = jnp.einsum('hqk,hkd->hqd', p, vh, preferred_element_type=f32)   # (H, S, d_k)

    # Pack heads back onto the lane axis: exactly .transpose(1,2).view(B,S,E) of the
    # module.  Single relayout, lane-dense (S, E) slab feeding the output projection.
    x = jnp.transpose(ho, (1, 0, 2)).reshape(S, E)

    out = lax.dot_general(x, wo_ref[...], nt, preferred_element_type=f32) + bo_ref[...]
    o_ref[...] = out.astype(o_ref.dtype)

    if p_refs:                             # optional p_attn (= self.attn) output
        p_refs[0][...] = p.astype(p_refs[0].dtype)


# ---------------------------------------------------------------------------
# One-time parameter preparation (outside the per-call forward)
# ---------------------------------------------------------------------------
def prepare_params(params, head, dtype=jnp.float32):
    """Transpose PyTorch (out,in) weights to (in,out) ONCE and fold 1/sqrt(d_k) into
    the query projection.  On v6e/v7x pass dtype=jnp.bfloat16 to halve weight bytes
    (matmuls still accumulate in f32 inside the kernel)."""
    E = params["w"][0].shape[0]
    d_k = E // head
    scale = 1.0 / math.sqrt(d_k)
    return {
        "wq": (params["w"][0] * scale).T.astype(dtype),
        "bq": (params["b"][0] * scale).reshape(1, E).astype(dtype),
        "wk": params["w"][1].T.astype(dtype),
        "bk": params["b"][1].reshape(1, E).astype(dtype),
        "wv": params["w"][2].T.astype(dtype),
        "bv": params["b"][2].reshape(1, E).astype(dtype),
        "wo": params["w"][-1].T.astype(dtype),
        "bo": params["b"][-1].reshape(1, E).astype(dtype),
    }


# ---------------------------------------------------------------------------
# Wrapper
# ---------------------------------------------------------------------------
def multi_head_attention_forward(prepped, query, key, value, head, *, return_attn=False):
    """Mirrors MultiHeadAttention.forward with mask=None, dropout as identity.

    Returns the module output (B, S, E); if return_attn=True also returns
    p_attn (B, head, S, S) (= self.attn)."""
    B, S, E = query.shape
    d_k = E // head
    out_dtype = query.dtype

    # Feed the MXU in the weights' dtype (bf16 on v6e/v7x if prepared that way).
    mxu_dtype = prepped["wq"].dtype
    if query.dtype != mxu_dtype:
        query = query.astype(mxu_dtype)
        key = key.astype(mxu_dtype)
        value = value.astype(mxu_dtype)

    kern = functools.partial(_mha_fused_kernel, H=head, d_k=d_k)

    bspec_x = pl.BlockSpec((None, S, E), lambda b: (b, 0, 0))   # per-batch activation
    bspec_w = pl.BlockSpec((E, E), lambda b: (0, 0))            # weights: broadcast
    bspec_b = pl.BlockSpec((1, E), lambda b: (0, 0))            # biases:  broadcast

    out_shape = [jax.ShapeDtypeStruct((B, S, E), out_dtype)]
    out_specs = [pl.BlockSpec((None, S, E), lambda b: (b, 0, 0))]
    if return_attn:
        out_shape.append(jax.ShapeDtypeStruct((B, head, S, S), jnp.float32))
        out_specs.append(pl.BlockSpec((None, head, S, S), lambda b: (b, 0, 0, 0)))

    results = pl.pallas_call(
        kern,
        out_shape=tuple(out_shape),
        grid=(B,),
        in_specs=[bspec_x, bspec_x, bspec_x,
                  bspec_w, bspec_b, bspec_w, bspec_b, bspec_w, bspec_b,
                  bspec_w, bspec_b],
        out_specs=tuple(out_specs),
        compiler_params=pltpu.CompilerParams(
            dimension_semantics=("parallel",)   # shards batch across TCs on v7x
        ),
    )(query, key, value,
      prepped["wq"], prepped["bq"], prepped["wk"], prepped["bk"],
      prepped["wv"], prepped["bv"], prepped["wo"], prepped["bo"])

    if return_attn:
        out, p_attn = results
        return out, p_attn
    (out,) = results
    return out


# ---------------------------------------------------------------------------
# Pure-JAX reference (for correctness check only)
# ---------------------------------------------------------------------------
def reference_forward(params, query, key, value, head):
    B, S, E = query.shape
    d_k = E // head

    def lin(w, b, x):
        return x @ w.T + b

    def split(x):
        return x.reshape(B, S, head, d_k).transpose(0, 2, 1, 3)

    q = split(lin(params["w"][0], params["b"][0], query))
    k = split(lin(params["w"][1], params["b"][1], key))
    v = split(lin(params["w"][2], params["b"][2], value))
    scores = jnp.einsum("bhqd,bhkd->bhqk", q, k) / math.sqrt(d_k)
    p = jax.nn.softmax(scores, axis=-1)
    x = jnp.einsum("bhqk,bhkd->bhqd", p, v)
    x = x.transpose(0, 2, 1, 3).reshape(B, S, E)
    return lin(params["w"][-1], params["b"][-1], x), p


# ---------------------------------------------------------------------------
# main
# ---------------------------------------------------------------------------
if __name__ == "__main__":
    # Module config: MultiHeadAttention(head=4, embedding_dim=32, dropout=0.0, num_att=4)
    head = 4
    embedding_dim = 32
    num_att = 4
    B, S = 2, 8

    key0 = jax.random.PRNGKey(0)
    keys = jax.random.split(key0, 2 * num_att + 3)

    # Deterministic nn.Linear-style init: U(-1/sqrt(in), 1/sqrt(in))
    bound = 1.0 / math.sqrt(embedding_dim)
    ws = [
        jax.random.uniform(
            keys[i], (embedding_dim, embedding_dim), jnp.float32, -bound, bound
        )
        for i in range(num_att)
    ]
    bs = [
        jax.random.uniform(
            keys[num_att + i], (embedding_dim,), jnp.float32, -bound, bound
        )
        for i in range(num_att)
    ]
    params = {"w": ws, "b": bs}

    query = jax.random.normal(keys[-3], (B, S, embedding_dim), jnp.float32)
    key_in = jax.random.normal(keys[-2], (B, S, embedding_dim), jnp.float32)
    value = jax.random.normal(keys[-1], (B, S, embedding_dim), jnp.float32)

    # One-time prep: transpose weights, fold 1/sqrt(d_k) into the q projection.
    prepped = prepare_params(params, head)

    # Path 1: also emit p_attn (= self.attn) for the correctness check.
    out, attn = multi_head_attention_forward(
        params if False else prepped, query, key_in, value, head, return_attn=True
    )
    out = jax.block_until_ready(out)
    attn = jax.block_until_ready(attn)

    # Path 2: module return value only (no (B,H,S,S) writeback).
    out_only = multi_head_attention_forward(prepped, query, key_in, value, head)
    out_only = jax.block_until_ready(out_only)

    ref_out, ref_attn = reference_forward(params, query, key_in, value, head)
    assert out.shape == (B, S, embedding_dim)
    assert attn.shape == (B, head, S, S)
    assert jnp.allclose(attn, ref_attn, atol=1e-3, rtol=1e-3)
    assert jnp.allclose(out, ref_out, atol=2e-3, rtol=2e-3)
    assert jnp.allclose(out_only, ref_out, atol=2e-3, rtol=2e-3)

    print("KERNEL_OK")
</pallas_src>

<mosaic_0001>
module attributes {stable_mosaic.version = 11 : i64} {
  func.func @_mha_fused_kernel(%arg0: i32, %arg1: memref<1x8x32xf32, #tpu.memory_space<vmem>>, %arg2: memref<1x8x32xf32, #tpu.memory_space<vmem>>, %arg3: memref<1x8x32xf32, #tpu.memory_space<vmem>>, %arg4: memref<32x32xf32, #tpu.memory_space<vmem>>, %arg5: memref<1x32xf32, #tpu.memory_space<vmem>>, %arg6: memref<32x32xf32, #tpu.memory_space<vmem>>, %arg7: memref<1x32xf32, #tpu.memory_space<vmem>>, %arg8: memref<32x32xf32, #tpu.memory_space<vmem>>, %arg9: memref<1x32xf32, #tpu.memory_space<vmem>>, %arg10: memref<32x32xf32, #tpu.memory_space<vmem>>, %arg11: memref<1x32xf32, #tpu.memory_space<vmem>>, %arg12: memref<1x8x32xf32, #tpu.memory_space<vmem>>, %arg13: memref<1x4x8x8xf32, #tpu.memory_space<vmem>>) attributes {dimension_semantics = [#tpu.dimension_semantics<parallel>], iteration_bounds = array<i64: 2>, scalar_prefetch = 0 : i64, scratch_operands = 0 : i64, tpu.core_type = #tpu.core_type<tc>, window_params = [{transform_indices = @transform_0, window_bounds = array<i64: 1, 8, 32>}, {transform_indices = @transform_1, window_bounds = array<i64: 1, 8, 32>}, {transform_indices = @transform_2, window_bounds = array<i64: 1, 8, 32>}, {pipeline_mode = #tpu.pipeline_mode<synchronous>, transform_indices = @transform_3, window_bounds = array<i64: 32, 32>}, {pipeline_mode = #tpu.pipeline_mode<synchronous>, transform_indices = @transform_4, window_bounds = array<i64: 1, 32>}, {pipeline_mode = #tpu.pipeline_mode<synchronous>, transform_indices = @transform_5, window_bounds = array<i64: 32, 32>}, {pipeline_mode = #tpu.pipeline_mode<synchronous>, transform_indices = @transform_6, window_bounds = array<i64: 1, 32>}, {pipeline_mode = #tpu.pipeline_mode<synchronous>, transform_indices = @transform_7, window_bounds = array<i64: 32, 32>}, {pipeline_mode = #tpu.pipeline_mode<synchronous>, transform_indices = @transform_8, window_bounds = array<i64: 1, 32>}, {pipeline_mode = #tpu.pipeline_mode<synchronous>, transform_indices = @transform_9, window_bounds = array<i64: 32, 32>}, {pipeline_mode = #tpu.pipeline_mode<synchronous>, transform_indices = @transform_10, window_bounds = array<i64: 1, 32>}, {transform_indices = @transform_11, window_bounds = array<i64: 1, 8, 32>}, {transform_indices = @transform_12, window_bounds = array<i64: 1, 4, 8, 8>}]} {
    %c0 = arith.constant 0 : index
    %c0_0 = arith.constant 0 : index
    %c0_1 = arith.constant 0 : index
    %0 = vector.load %arg1[%c0, %c0_0, %c0_1] : memref<1x8x32xf32, #tpu.memory_space<vmem>>, vector<1x8x32xf32>
    %1 = vector.shape_cast %0 : vector<1x8x32xf32> to vector<8x32xf32>
    %c0_2 = arith.constant 0 : index
    %c0_3 = arith.constant 0 : index
    %2 = vector.load %arg4[%c0_2, %c0_3] : memref<32x32xf32, #tpu.memory_space<vmem>>, vector<32x32xf32>
    %cst = arith.constant dense<0.000000e+00> : vector<8x32xf32>
    %3 = tpu.matmul %1, %2, %cst {dimension_numbers = #tpu.dot_dimension_numbers<[1], [0], [0], [1], [0, 0, 1, 1], [], []>} : vector<8x32xf32>, vector<32x32xf32>, vector<8x32xf32> -> vector<8x32xf32>
    %c0_4 = arith.constant 0 : index
    %c0_5 = arith.constant 0 : index
    %4 = vector.load %arg5[%c0_4, %c0_5] : memref<1x32xf32, #tpu.memory_space<vmem>>, vector<1x32xf32>
    %5 = vector.broadcast %4 : vector<1x32xf32> to vector<8x32xf32>
    %6 = arith.addf %3, %5 : vector<8x32xf32>
    %c0_6 = arith.constant 0 : index
    %c0_7 = arith.constant 0 : index
    %c0_8 = arith.constant 0 : index
    %7 = vector.load %arg2[%c0_6, %c0_7, %c0_8] : memref<1x8x32xf32, #tpu.memory_space<vmem>>, vector<1x8x32xf32>
    %8 = vector.shape_cast %7 : vector<1x8x32xf32> to vector<8x32xf32>
    %c0_9 = arith.constant 0 : index
    %c0_10 = arith.constant 0 : index
    %9 = vector.load %arg6[%c0_9, %c0_10] : memref<32x32xf32, #tpu.memory_space<vmem>>, vector<32x32xf32>
    %cst_11 = arith.constant dense<0.000000e+00> : vector<8x32xf32>
    %10 = tpu.matmul %8, %9, %cst_11 {dimension_numbers = #tpu.dot_dimension_numbers<[1], [0], [0], [1], [0, 0, 1, 1], [], []>} : vector<8x32xf32>, vector<32x32xf32>, vector<8x32xf32> -> vector<8x32xf32>
    %c0_12 = arith.constant 0 : index
    %c0_13 = arith.constant 0 : index
    %11 = vector.load %arg7[%c0_12, %c0_13] : memref<1x32xf32, #tpu.memory_space<vmem>>, vector<1x32xf32>
    %12 = vector.broadcast %11 : vector<1x32xf32> to vector<8x32xf32>
    %13 = arith.addf %10, %12 : vector<8x32xf32>
    %c0_14 = arith.constant 0 : index
    %c0_15 = arith.constant 0 : index
    %c0_16 = arith.constant 0 : index
    %14 = vector.load %arg3[%c0_14, %c0_15, %c0_16] : memref<1x8x32xf32, #tpu.memory_space<vmem>>, vector<1x8x32xf32>
    %15 = vector.shape_cast %14 : vector<1x8x32xf32> to vector<8x32xf32>
    %c0_17 = arith.constant 0 : index
    %c0_18 = arith.constant 0 : index
    %16 = vector.load %arg8[%c0_17, %c0_18] : memref<32x32xf32, #tpu.memory_space<vmem>>, vector<32x32xf32>
    %cst_19 = arith.constant dense<0.000000e+00> : vector<8x32xf32>
    %17 = tpu.matmul %15, %16, %cst_19 {dimension_numbers = #tpu.dot_dimension_numbers<[1], [0], [0], [1], [0, 0, 1, 1], [], []>} : vector<8x32xf32>, vector<32x32xf32>, vector<8x32xf32> -> vector<8x32xf32>
    %c0_20 = arith.constant 0 : index
    %c0_21 = arith.constant 0 : index
    %18 = vector.load %arg9[%c0_20, %c0_21] : memref<1x32xf32, #tpu.memory_space<vmem>>, vector<1x32xf32>
    %19 = vector.broadcast %18 : vector<1x32xf32> to vector<8x32xf32>
    %20 = arith.addf %17, %19 : vector<8x32xf32>
    %21 = vector.shape_cast %6 : vector<8x32xf32> to vector<8x4x8xf32>
    %22 = tpu.transpose %21, [1, 0, 2] : vector<8x4x8xf32> -> vector<4x8x8xf32>
    %23 = vector.shape_cast %13 : vector<8x32xf32> to vector<8x4x8xf32>
    %24 = tpu.transpose %23, [1, 0, 2] : vector<8x4x8xf32> -> vector<4x8x8xf32>
    %25 = vector.shape_cast %20 : vector<8x32xf32> to vector<8x4x8xf32>
    %26 = tpu.transpose %25, [1, 0, 2] : vector<8x4x8xf32> -> vector<4x8x8xf32>
    "tpu.trace_start"() <{level = 10 : i32, message = "hqd,hkd->hqk"}> : () -> ()
    %cst_22 = arith.constant dense<0.000000e+00> : vector<4x8x8xf32>
    %27 = tpu.matmul %22, %24, %cst_22 {dimension_numbers = #tpu.dot_dimension_numbers<[2], [2], [1], [1], [0, 0, 0, 1, 1, 1], [0], [0]>} : vector<4x8x8xf32>, vector<4x8x8xf32>, vector<4x8x8xf32> -> vector<4x8x8xf32>
    "tpu.trace_stop"() : () -> ()
    %cst_23 = arith.constant dense<0xFF800000> : vector<4x8xf32>
    %28 = vector.multi_reduction <maximumf>, %27, %cst_23 [2] : vector<4x8x8xf32> to vector<4x8xf32>
    %29 = vector.shape_cast %28 : vector<4x8xf32> to vector<4x8x1xf32>
    %30 = vector.broadcast %29 : vector<4x8x1xf32> to vector<4x8x8xf32>
    %31 = arith.subf %27, %30 : vector<4x8x8xf32>
    %32 = math.exp %31 : vector<4x8x8xf32>
    %cst_24 = arith.constant dense<0.000000e+00> : vector<4x8xf32>
    %33 = vector.multi_reduction <add>, %32, %cst_24 [2] : vector<4x8x8xf32> to vector<4x8xf32>
    %34 = vector.shape_cast %33 : vector<4x8xf32> to vector<4x8x1xf32>
    %35 = tpu.reciprocal %34 : vector<4x8x1xf32> -> vector<4x8x1xf32>
    %36 = vector.broadcast %35 : vector<4x8x1xf32> to vector<4x8x8xf32>
    %37 = arith.mulf %32, %36 : vector<4x8x8xf32>
    "tpu.trace_start"() <{level = 10 : i32, message = "hqk,hkd->hqd"}> : () -> ()
    %cst_25 = arith.constant dense<0.000000e+00> : vector<4x8x8xf32>
    %38 = tpu.matmul %37, %26, %cst_25 {dimension_numbers = #tpu.dot_dimension_numbers<[2], [1], [1], [2], [0, 0, 0, 1, 1, 2], [0], [0]>} : vector<4x8x8xf32>, vector<4x8x8xf32>, vector<4x8x8xf32> -> vector<4x8x8xf32>
    "tpu.trace_stop"() : () -> ()
    %39 = tpu.transpose %38, [1, 0, 2] : vector<4x8x8xf32> -> vector<8x4x8xf32>
    %40 = vector.shape_cast %39 : vector<8x4x8xf32> to vector<8x32xf32>
    %c0_26 = arith.constant 0 : index
    %c0_27 = arith.constant 0 : index
    %41 = vector.load %arg10[%c0_26, %c0_27] : memref<32x32xf32, #tpu.memory_space<vmem>>, vector<32x32xf32>
    %cst_28 = arith.constant dense<0.000000e+00> : vector<8x32xf32>
    %42 = tpu.matmul %40, %41, %cst_28 {dimension_numbers = #tpu.dot_dimension_numbers<[1], [0], [0], [1], [0, 0, 1, 1], [], []>} : vector<8x32xf32>, vector<32x32xf32>, vector<8x32xf32> -> vector<8x32xf32>
    %c0_29 = arith.constant 0 : index
    %c0_30 = arith.constant 0 : index
    %43 = vector.load %arg11[%c0_29, %c0_30] : memref<1x32xf32, #tpu.memory_space<vmem>>, vector<1x32xf32>
    %44 = vector.broadcast %43 : vector<1x32xf32> to vector<8x32xf32>
    %45 = arith.addf %42, %44 : vector<8x32xf32>
    %c0_31 = arith.constant 0 : index
    %c0_32 = arith.constant 0 : index
    %c0_33 = arith.constant 0 : index
    %46 = vector.load %arg12[%c0_31, %c0_32, %c0_33] : memref<1x8x32xf32, #tpu.memory_space<vmem>>, vector<1x8x32xf32>
    %47 = vector.shape_cast %46 : vector<1x8x32xf32> to vector<8x32xf32>
    %48 = vector.shape_cast %45 : vector<8x32xf32> to vector<1x8x32xf32>
    tpu.vector_store %arg12[%c0_31, %c0_32, %c0_33], %48 {strides = array<i32>} : memref<1x8x32xf32, #tpu.memory_space<vmem>>, vector<1x8x32xf32>,
    %c0_34 = arith.constant 0 : index
    %c0_35 = arith.constant 0 : index
    %c0_36 = arith.constant 0 : index
    %c0_37 = arith.constant 0 : index
    %49 = vector.load %arg13[%c0_34, %c0_35, %c0_36, %c0_37] : memref<1x4x8x8xf32, #tpu.memory_space<vmem>>, vector<1x4x8x8xf32>
    %50 = vector.shape_cast %49 : vector<1x4x8x8xf32> to vector<4x8x8xf32>
    %51 = vector.shape_cast %37 : vector<4x8x8xf32> to vector<1x4x8x8xf32>
    tpu.vector_store %arg13[%c0_34, %c0_35, %c0_36, %c0_37], %51 {strides = array<i32>} : memref<1x4x8x8xf32, #tpu.memory_space<vmem>>, vector<1x4x8x8xf32>,
    return
  }
  func.func @transform_0(%arg0: i32) -> (i32, i32, i32) {
    %c0_i32 = arith.constant 0 : i32
    %c0_i32_0 = arith.constant 0 : i32
    %c0_i32_1 = arith.constant 0 : i32
    return %arg0, %c0_i32, %c0_i32_0 : i32, i32, i32
  }
  func.func @transform_1(%arg0: i32) -> (i32, i32, i32) {
    %c0_i32 = arith.constant 0 : i32
    %c0_i32_0 = arith.constant 0 : i32
    %c0_i32_1 = arith.constant 0 : i32
    return %arg0, %c0_i32, %c0_i32_0 : i32, i32, i32
  }
  func.func @transform_2(%arg0: i32) -> (i32, i32, i32) {
    %c0_i32 = arith.constant 0 : i32
    %c0_i32_0 = arith.constant 0 : i32
    %c0_i32_1 = arith.constant 0 : i32
    return %arg0, %c0_i32, %c0_i32_0 : i32, i32, i32
  }
  func.func @transform_3(%arg0: i32) -> (i32, i32) {
    %c0_i32 = arith.constant 0 : i32
    %c0_i32_0 = arith.constant 0 : i32
    %c0_i32_1 = arith.constant 0 : i32
    return %c0_i32, %c0_i32_0 : i32, i32
  }
  func.func @transform_4(%arg0: i32) -> (i32, i32) {
    %c0_i32 = arith.constant 0 : i32
    %c0_i32_0 = arith.constant 0 : i32
    %c0_i32_1 = arith.constant 0 : i32
    return %c0_i32, %c0_i32_0 : i32, i32
  }
  func.func @transform_5(%arg0: i32) -> (i32, i32) {
    %c0_i32 = arith.constant 0 : i32
    %c0_i32_0 = arith.constant 0 : i32
    %c0_i32_1 = arith.constant 0 : i32
    return %c0_i32, %c0_i32_0 : i32, i32
  }
  func.func @transform_6(%arg0: i32) -> (i32, i32) {
    %c0_i32 = arith.constant 0 : i32
    %c0_i32_0 = arith.constant 0 : i32
    %c0_i32_1 = arith.constant 0 : i32
    return %c0_i32, %c0_i32_0 : i32, i32
  }
  func.func @transform_7(%arg0: i32) -> (i32, i32) {
    %c0_i32 = arith.constant 0 : i32
    %c0_i32_0 = arith.constant 0 : i32
    %c0_i32_1 = arith.constant 0 : i32
    return %c0_i32, %c0_i32_0 : i32, i32
  }
  func.func @transform_8(%arg0: i32) -> (i32, i32) {
    %c0_i32 = arith.constant 0 : i32
    %c0_i32_0 = arith.constant 0 : i32
    %c0_i32_1 = arith.constant 0 : i32
    return %c0_i32, %c0_i32_0 : i32, i32
  }
  func.func @transform_9(%arg0: i32) -> (i32, i32) {
    %c0_i32 = arith.constant 0 : i32
    %c0_i32_0 = arith.constant 0 : i32
    %c0_i32_1 = arith.constant 0 : i32
    return %c0_i32, %c0_i32_0 : i32, i32
  }
  func.func @transform_10(%arg0: i32) -> (i32, i32) {
    %c0_i32 = arith.constant 0 : i32
    %c0_i32_0 = arith.constant 0 : i32
    %c0_i32_1 = arith.constant 0 : i32
    return %c0_i32, %c0_i32_0 : i32, i32
  }
  func.func @transform_11(%arg0: i32) -> (i32, i32, i32) {
    %c0_i32 = arith.constant 0 : i32
    %c0_i32_0 = arith.constant 0 : i32
    %c0_i32_1 = arith.constant 0 : i32
    return %arg0, %c0_i32, %c0_i32_0 : i32, i32, i32
  }
  func.func @transform_12(%arg0: i32) -> (i32, i32, i32, i32) {
    %c0_i32 = arith.constant 0 : i32
    %c0_i32_0 = arith.constant 0 : i32
    %c0_i32_1 = arith.constant 0 : i32
    %c0_i32_2 = arith.constant 0 : i32
    return %arg0, %c0_i32, %c0_i32_0, %c0_i32_1 : i32, i32, i32, i32
  }
}

</mosaic_0001>

<bundles_post_ra>
// kernel: tpu_custom_call.1
= control target key start
LH: loop header
LB: loop body
LE: loop exit
PB: predicated region body
PF: predicated region fallthrough
CT: control target
= control target key end

     0   :  { %s3559_s0 = inlined_call_operand.hbm [shape: f32[2,8,32], index: 0, kind: input, shape index: {}]   ;;  %s3560_s1 = inlined_call_operand.hbm [shape: f32[2,8,32], index: 1, kind: input, shape index: {}]   ;;  %s3561_s2 = inlined_call_operand.hbm [shape: f32[2,8,32], index: 2, kind: input, shape index: {}]   ;;  %s3562_s3 = inlined_call_operand.hbm [shape: f32[32,32], index: 3, kind: input, shape index: {}]   ;;  %s3563_s4 = inlined_call_operand.vmem [shape: f32[1,32], index: 4, kind: input, shape index: {}]   ;;  %s3564_s5 = inlined_call_operand.hbm [shape: f32[32,32], index: 5, kind: input, shape index: {}]   ;;  %s3565_s6 = inlined_call_operand.vmem [shape: f32[1,32], index: 6, kind: input, shape index: {}]   ;;  %s3566_s7 = inlined_call_operand.hbm [shape: f32[32,32], index: 7, kind: input, shape index: {}]   ;;  %s3567_s8 = inlined_call_operand.vmem [shape: f32[1,32], index: 8, kind: input, shape index: {}]   ;;  %s3568_s9 = inlined_call_operand.hbm [shape: f32[32,32], index: 9, kind: input, shape index: {}]   ;;  %s3569_s10 = inlined_call_operand.vmem [shape: f32[1,32], index: 10, kind: input, shape index: {}]   ;;  %s3570_s11 = inlined_call_operand.hbm [shape: f32[2,8,32], index: 11, kind: output, shape index: {0}]   ;;  %s3571_s12 = inlined_call_operand.hbm [shape: f32[2,4,8,8], index: 12, kind: output, shape index: {1}]  }
   0x1   :  { %3593 = sst [smem:[#allocation28_spill]] %s3559_s0 }
   0x2   :  { %3594 = sst [smem:[#allocation29_spill]] %s3560_s1 }
   0x3   :  { %3595 = sst [smem:[#allocation30_spill]] %s3562_s3 }
   0x4   :  { %3596 = sst [smem:[#allocation31_spill]] %s3566_s7 }
   0x5   :  { %3597 = sst [smem:[#allocation32_spill]] %s3569_s10 }
   0x6   :  { %3598 = sst [smem:[#allocation33_spill]] %s3570_s11 }
   0x7   :  { %3599 = sst [smem:[#allocation34_spill]] %s3571_s12 }
   0x8   :  { %18 = vsyncpa [#allocation3], 0 }
   0x9   :  { %20 = vsyncpa [#allocation3 + $0x1], 0 }
   0xa   :  { %21 = vsyncpa [#allocation6], 0 }
   0xb   :  { %23 = vsyncpa [#allocation6 + $0x1], 0 }
   0xc   :  { %24 = vsyncpa [#allocation9], 0 }
   0xd   :  { %25 = vsyncpa [#allocation12], 0 }
   0xe   :  { %26 = vsyncpa [#allocation4], 0 }
   0xf   :  { %28 = vsyncpa [#allocation4 + $0x1], 0 }
  0x10   :  { %29 = vsyncpa [#allocation16], 0 }
  0x11   :  { %31 = vsyncpa [#allocation16 + $0x1], 0  ;;  %s3057_s21 = smov 0   ;;  %s3059_s22 = smov 0  }
  0x12   :  { %s3061_s23 = smov 0   ;;  %s3063_s24 = smov 0  }
  0x13 LB: > { %3600 = sst [smem:[#allocation23_spill]] %s2956_s21  ;;  %s2970_s25 = smov [#allocation8]   ;;  %s2968_s24 = sphi %s3063_s24, %s3638_s24   ;;  %s2964_s23 = sphi %s3061_s23, %s3642_s23   ;;  %s2960_s22 = sphi %s3059_s22, %s3641_s22   ;;  %s2956_s21 = sphi %s3057_s21, %s3640_s21  }
  0x14   : > { %3601 = sst [smem:[#allocation24_spill]] %s2968_s24  ;;  %s352_s26 = sshll.u32 %s2970_s25, 4  ;;  %s353_s26 = int_to_ptr.vmem [resolvable:$true] %s352_s26 }
  0x15   : > { %s3078_s27 = sadd.s32 4294967295, %s2968_s24   ;;  %p2365_p0 = scmp.ge.s32.totalorder %s2968_s24, 1 }
  0x16   : > { %p3585_p1 = scmp.eq.s32.totalorder %s3078_s27, 0  ;;  %p340_p2 = scmp.lt.s32.totalorder %s2968_s24, 3 }
  0x17   : > { %s2971_s29 = smov [#allocation11]   ;;  %s2685_s14 = scalar_lea.vmem %s353_s26, 512 }
  0x18   : > { %p3083_p3 = pnand %p2365_p0, %p340_p2  ;;  %s384_s30 = sshll.u32 %s2971_s29, 4  ;;  %s385_s30 = int_to_ptr.vmem [resolvable:$true] %s384_s30 }
  0x19   : > { %p2686_p8 = scmp.ne.s32.totalorder %s353_s26, %s2685_s14  ;;  %p2693_p11 = scmp.lt.s32.totalorder %s353_s26, %s353_s26 }
  0x1a   : > { %s3602_s28 = scalar_select %p3083_p3, 1, 0 }
  0x1b   : > { %p2569_p5 = pneg %p3083_p3  ;;  %p2694_p12 = scmp.lt.s32.totalorder %s2685_s14, %s2685_s14 }
  0x1d   : > { %p3092_p6 = pnand %p2569_p5, %p3585_p1  ;;  %p2695_p13 = por %p2694_p12, %p2693_p11 }
  0x1f   : > { %s3603_s13 = scalar_select %p3092_p6, 1, 0 }
  0x20   : > { %p3572_p7 = pneg %p3092_p6 }
  0x22   : > { %p2688_p9 = pnand %p2686_p8, %p3572_p7 }
  0x24   : > { %p2689_p10 = pneg %p2688_p9 }
  0x26   : > { %p2696_p0 = pnand %p2695_p13, %p2689_p10 }
  0x28   : > { %2699 = shalt.err (!%p2696_p0)
}
  0x29   : > { %s3573_s15 = smov 128   ;;  %s3575_s16 = smov 8  }
  0x2a   : > { %s3604_s3 = sld [smem:[#allocation30_spill]]  ;;  %s2711_s19 = scalar_lea.vmem %s385_s30, 512 }
  0x2b   : > { %p2712_p2 = scmp.ne.s32.totalorder %s385_s30, %s2711_s19  ;;  %p2719_p9 = scmp.lt.s32.totalorder %s385_s30, %s385_s30 }
  0x2c   : > { %p2720_p10 = scmp.lt.s32.totalorder %s2711_s19, %s2711_s19 }
  0x2d   : > { %p2714_p5 = pnand %p2712_p2, %p3572_p7 }
  0x2e   : > { %p2721_p11 = por %p2720_p10, %p2719_p9 }
  0x2f   : > { %p2715_p8 = pneg %p2714_p5 }
  0x30   : > { %2572 = dma.hbm_to_vmem [thread:$0]  (!%p3092_p6), %s3604_s3, 512, %s353_s26, [#allocation9], %s3573_s15, %s3573_s15, %s3575_s16  }
  0x31   : > { %p2722_p12 = pnand %p2721_p11, %p2715_p8 }
  0x33   : > { %2725 = shalt.err (!%p2722_p12)
}
  0x34   : > { %s3605_s7 = sld [smem:[#allocation31_spill]]  ;;  %s2364_s26 = sadd.s32 4294967294, %s2968_s24  }
  0x35   : > { %s3122_s29 = sadd.s32 1, %s2968_s24   ;;  %s44_s17 = sadd.s32 1, %s2964_s23 }
  0x36   : > { %3606 = sst [smem:[#allocation25_spill]] %s3122_s29  ;;  %s41_s14 = ssub.s32 %s2968_s24, %s3122_s29 }
  0x37   : > { %p42_p13 = scmp.eq.s32.totalorder %s41_s14, 0  ;;  %p51_p0 = scmp.ne.s32.totalorder %s2964_s23, %s2960_s22 }
  0x38   : > { %p52_p2 = scmp.eq.s32.totalorder %s2968_s24, 0  ;;  %p57_p5 = scmp.ne.s32.totalorder %s2960_s22, %s2956_s21 }
  0x39   : > { %s3133_s18 = scalar_select %p42_p13, %s2964_s23, %s44_s17  }
  0x3a   : > { %2578 = dma.hbm_to_vmem [thread:$0]  (!%p3092_p6), %s3605_s7, 512, %s385_s30, [#allocation12], %s3573_s15, %s3573_s15, %s3575_s16  }
  0x3b   : > { %3607 = sst [smem:[#allocation26_spill]] %s3133_s18  ;;  %p53_p8 = por %p52_p2, %p51_p0 }
  0x3c   : > { %p3137_p9 = por %p3585_p1, %p57_p5  ;;  %p301_p10 = scmp.eq.s32.totalorder %s3078_s27, 1 }
  0x3d   : > { %p307_p11 = scmp.eq.s32.totalorder %s2364_s26, 1  ;;  %p2603_p12 = scmp.lt.s32.totalorder %s2968_s24, 2 }
  0x3e   : > { %s3608_s19 = scalar_select %p3137_p9, 1, 0 }
  0x3f   : > { %s3577_s30 = sand.u32 1, %s2964_s23   ;;  %p3144_p4 = por %p301_p10, %p51_p0 }
  0x40   : > { %p3148_p7 = por %p307_p11, %p57_p5  ;;  %s3154_s14 = sshll.u32 %s3577_s30, 3 }
  0x41   : > { %s3609_s20 = scalar_select %p3144_p4, 1, 0 }
  0x42   : > { %s3610_s25 = scalar_select %p3148_p7, 1, 0 }
  0x43   : > { %s3157_s17 = sshll.u32 %s2968_s24, 7  ;;  %p3159_p13 = pnand %p2603_p12, %p53_p8 }
  0x44   : > { %3611 = sst [smem:[#allocation27_spill]] %s3610_s25  ;;  %s435_s26 = sand.u32 1, %s2968_s24  }
  0x45   : > { %s3613_s1 = sld [smem:[#allocation29_spill]]  ;;  %s439_s30 = scalar_lea.vmem [#allocation5], %s3154_s14 }
  0x46   : > { %s446_s18 = sshll.u32 %s439_s30, 4  ;;  %s2974_s29 = smov [#allocation10]   ;;  %s3171_s18 = int_to_ptr.vmem [resolvable:$true] %s446_s18 }
  0x47   : > { %s368_s25 = sshll.u32 %s2974_s29, 4  ;;  %s3173_s21 = scalar_lea.sflag [#allocation6], %s435_s26  ;;  %s369_s25 = int_to_ptr.vmem [resolvable:$true] %s368_s25 }
  0x48   : > { %p3179_p2 = pneg %p3159_p13 }
  0x4a   : > { %s3614_s24 = scalar_select %p3179_p2, 1, 0 }
  0x4b   : > { %s3168_s7 = scalar_lea.hbm %s3613_s1, %s3157_s17  ;;  %s2731_s30 = scalar_lea.hbm %s3613_s1, 256 }
  0x4c   : > { %s2726_s11 = scalar_lea.hbm %s3168_s7, 128  ;;  %p2732_p10 = scmp.lt.s32.totalorder %s3168_s7, %s3613_s1 }
  0x4d   : > { %p2727_p0 = scmp.ne.s32.totalorder %s3168_s7, %s2726_s11  ;;  %p2733_p11 = scmp.lt.s32.totalorder %s2731_s30, %s2726_s11 }
  0x4f   : > { %p2729_p5 = pnand %p3179_p2, %p2727_p0  ;;  %p2734_p12 = por %p2733_p11, %p2732_p10 }
  0x51   : > { %p2730_p8 = pneg %p2729_p5 }
  0x53   : > { %p2735_p1 = pnand %p2734_p12, %p2730_p8 }
  0x55   : > { %2738 = shalt.err (!%p2735_p1)
}
  0x56   : > { %s2739_s29 = scalar_lea.vmem %s3171_s18, 128  ;;  %s2975_s26 = smov [#allocation5]  }
  0x57   : > { %p2740_p7 = scmp.ne.s32.totalorder %s3171_s18, %s2739_s29  ;;  %s2744_s3 = sshll.u32 %s2975_s26, 4  ;;  %s2745_s3 = int_to_ptr.vmem [resolvable:$false] %s2744_s3 }
  0x58   : > { %s2746_s16 = scalar_lea.vmem %s2745_s3, 256  ;;  %p2747_p4 = scmp.lt.s32.totalorder %s3171_s18, %s2745_s3 }
  0x59   : > { %p2742_p0 = pnand %p2740_p7, %p3179_p2  ;;  %p2748_p9 = scmp.lt.s32.totalorder %s2746_s16, %s2739_s29 }
  0x5b   : > { %p2743_p5 = pneg %p2742_p0  ;;  %p2749_p3 = por %p2748_p9, %p2747_p4 }
  0x5d   : > { %p2750_p6 = pnand %p2749_p3, %p2743_p5 }
  0x5f   : > { %2753 = shalt.err (!%p2750_p6)
}
  0x60   : > { %2588 = dma.hbm_to_vmem [thread:$0]  (!%p3159_p13), %s3168_s7, 128, %s3171_s18, %s3173_s21  }
  0x61   : > { %s2765_s10 = scalar_lea.vmem %s369_s25, 512  ;;  %p3615_p7 = scmp.ne.s32.totalorder %s3603_s13, 0 }
  0x62   : > { %p2766_p1 = scmp.ne.s32.totalorder %s369_s25, %s2765_s10  ;;  %p2773_p12 = scmp.lt.s32.totalorder %s369_s25, %s369_s25 }
  0x63   : > { %p3616_p8 = pneg %p3615_p7  ;;  %p2774_p0 = scmp.lt.s32.totalorder %s2765_s10, %s2765_s10 }
  0x65   : > { %p2768_p10 = pnand %p2766_p1, %p3616_p8  ;;  %p2775_p2 = por %p2774_p0, %p2773_p12 }
  0x67   : > { %p2769_p11 = pneg %p2768_p10 }
  0x69   : > { %p2776_p4 = pnand %p2775_p2, %p2769_p11 }
  0x6b   : > { %2779 = shalt.err (!%p2776_p4)
}
  0x6c   : > { %s3617_s11 = smov 8   ;;  %s3618_s12 = smov 128  }
  0x6d   : > { %2575 = dma.hbm_to_vmem [thread:$0]  (!%p3615_p7), %s3564_s5, 512, %s369_s25, [#allocation9], %s3618_s12, %s3618_s12, %s3617_s11  }
  0x6e   : > { %s2976_s7 = smov [#allocation13]   ;;  %p3619_p6 = pmov %p3616_p8 }
  0x6f   : > { %s400_s18 = sshll.u32 %s2976_s7, 4  ;;  %s401_s18 = int_to_ptr.vmem [resolvable:$true] %s400_s18 }
  0x70   : > { %s2791_s26 = scalar_lea.vmem %s401_s18, 512  ;;  %p2799_p5 = scmp.lt.s32.totalorder %s401_s18, %s401_s18 }
  0x71   : > { %p2792_p3 = scmp.ne.s32.totalorder %s401_s18, %s2791_s26  ;;  %p2800_p1 = scmp.lt.s32.totalorder %s2791_s26, %s2791_s26 }
  0x73   : > { %p2794_p9 = pnand %p2792_p3, %p3619_p6  ;;  %p2801_p8 = por %p2800_p1, %p2799_p5 }
  0x75   : > { %p2795_p2 = pneg %p2794_p9 }
  0x77   : > { %p2802_p10 = pnand %p2801_p8, %p2795_p2 }
  0x79   : > { %2805 = shalt.err (!%p2802_p10)
}
  0x7a   : > { %2581 = dma.hbm_to_vmem [thread:$0]  (!%p3615_p7), %s3568_s9, 512, %s401_s18, [#allocation12], %s3618_s12, %s3618_s12, %s3617_s11  }
  0x7b   : > { %s3620_s0 = sld [smem:[#allocation28_spill]]  ;;  %s421_s13 = scalar_lea.vmem [#allocation2], %s3154_s14 }
  0x7c   : > { %s428_s29 = sshll.u32 %s421_s13, 4  ;;  %s3621_s7 = sand.u32 1, %s2964_s23   ;;  %s429_s29 = int_to_ptr.vmem [resolvable:$true] %s428_s29 }
  0x7d   : > { %s418_s26 = scalar_lea.sflag [#allocation3], %s3621_s7  ;;  %p3622_p12 = scmp.ne.s32.totalorder %s3614_s24, 0 }
  0x81   : > { %s3228_s30 = scalar_lea.hbm %s3620_s0, %s3157_s17  ;;  %s2811_s12 = scalar_lea.hbm %s3620_s0, 256 }
  0x82   : > { %s2806_s1 = scalar_lea.hbm %s3228_s30, 128  ;;  %p2812_p7 = scmp.lt.s32.totalorder %s3228_s30, %s3620_s0 }
  0x83   : > { %p2807_p11 = scmp.ne.s32.totalorder %s3228_s30, %s2806_s1  ;;  %p2813_p3 = scmp.lt.s32.totalorder %s2811_s12, %s2806_s1 }
  0x85   : > { %p2809_p0 = pnand %p2807_p11, %p3622_p12  ;;  %p2814_p6 = por %p2813_p3, %p2812_p7 }
  0x87   : > { %p2810_p4 = pneg %p2809_p0 }
  0x89   : > { %p2815_p9 = pnand %p2814_p6, %p2810_p4 }
  0x8b   : > { %2818 = shalt.err (!%p2815_p9)
}
  0x8c   : > { %s2819_s16 = scalar_lea.vmem %s429_s29, 128  ;;  %s2977_s10 = smov [#allocation2]  }
  0x8d   : > { %p2820_p2 = scmp.ne.s32.totalorder %s429_s29, %s2819_s16  ;;  %s2824_s13 = sshll.u32 %s2977_s10, 4  ;;  %s2825_s13 = int_to_ptr.vmem [resolvable:$false] %s2824_s13 }
  0x8e   : > { %s2826_s7 = scalar_lea.vmem %s2825_s13, 256  ;;  %p2827_p8 = scmp.lt.s32.totalorder %s429_s29, %s2825_s13 }
  0x8f   : > { %p2822_p5 = pnand %p2820_p2, %p3622_p12  ;;  %p2828_p10 = scmp.lt.s32.totalorder %s2826_s7, %s2819_s16 }
  0x91   : > { %p2823_p1 = pneg %p2822_p5  ;;  %p2829_p11 = por %p2828_p10, %p2827_p8 }
  0x93   : > { %p2830_p0 = pnand %p2829_p11, %p2823_p1 }
  0x95   : > { %2833 = shalt.err (!%p2830_p0)
}
  0x96   : > { %2585 = dma.hbm_to_vmem [thread:$0]  (!%p3159_p13), %s3228_s30, 128, %s429_s29, %s418_s26  }
  0x97   : > { %s462_s11 = scalar_lea.hbm %s3561_s2, %s3157_s17  ;;  %s457_s12 = scalar_lea.vmem [#allocation7], %s3154_s14 }
  0x98   : > { %s464_s18 = sshll.u32 %s457_s12, 4  ;;  %s2834_s3 = scalar_lea.hbm %s462_s11, 128  ;;  %s465_s18 = int_to_ptr.vmem [resolvable:$true] %s464_s18 }
  0x99   : > { %p2835_p4 = scmp.ne.s32.totalorder %s462_s11, %s2834_s3  ;;  %s2839_s13 = scalar_lea.hbm %s3561_s2, 256 }
  0x9a   : > { %p2840_p6 = scmp.lt.s32.totalorder %s462_s11, %s3561_s2  ;;  %p2841_p9 = scmp.lt.s32.totalorder %s2839_s13, %s2834_s3 }
  0x9b   : > { %p2837_p7 = pnand %p2835_p4, %p3622_p12 }
  0x9c   : > { %p2842_p2 = por %p2841_p9, %p2840_p6 }
  0x9d   : > { %p2838_p3 = pneg %p2837_p7 }
  0x9f   : > { %p2843_p5 = pnand %p2842_p2, %p2838_p3 }
  0xa1   : > { %2846 = shalt.err (!%p2843_p5)
}
  0xa2   : > { %s2847_s14 = scalar_lea.vmem %s465_s18, 128  ;;  %s2978_s17 = smov [#allocation7]  }
  0xa3   : > { %p2848_p1 = scmp.ne.s32.totalorder %s465_s18, %s2847_s14  ;;  %s2852_s30 = sshll.u32 %s2978_s17, 4  ;;  %s2853_s30 = int_to_ptr.vmem [resolvable:$false] %s2852_s30 }
  0xa4   : > { %s2854_s29 = scalar_lea.vmem %s2853_s30, 256  ;;  %p2855_p11 = scmp.lt.s32.totalorder %s465_s18, %s2853_s30 }
  0xa5   : > { %p2850_p8 = pnand %p2848_p1, %p3622_p12  ;;  %p2856_p0 = scmp.lt.s32.totalorder %s2854_s29, %s2847_s14 }
  0xa7   : > { %p2851_p10 = pneg %p2850_p8  ;;  %p2857_p4 = por %p2856_p0, %p2855_p11 }
  0xa9   : > { %p2858_p7 = pnand %p2857_p4, %p2851_p10 }
  0xab   : > { %2861 = shalt.err (!%p2858_p7)
}
  0xac   : > { %2591 = dma.hbm_to_vmem [thread:$0]  (!%p3159_p13), %s462_s11, 128, %s465_s18, %s3173_s21  }
  0xad   : > { %p3623_p3 = scmp.ne.s32.totalorder %s3602_s28, 0 }
  0xae   : > { %s3270_s0 = sand.u32 (!%p3623_p3), 1, %s2960_s22   ;;  %p3624_p12 = scmp.ne.s32.totalorder (!%p3623_p3), %s3608_s19, 0 }
  0xaf   : > { %473 = sbr.rel (%p3623_p3) target bundleno = 1605 (0x645), region = 64  ;;  %s3273_s24 = sshll.u32 (!%p3623_p3), %s3270_s0, 3 }
  0xb0   : > { %s476_s26 = scalar_lea.sflag (!%p3623_p3), [#allocation3], %s3270_s0  ;;  %s479_s1 = scalar_lea.vmem (!%p3623_p3), [#allocation2], %s3273_s24 }
  0xb4   : > { %2931 = dma.done.wait (%p3624_p12), %s476_s26, 128  }
  0xb5   : > { %2933 = vsyncadd (%p3624_p12), %s476_s26, 4294967168  ;;  %s484_s21 = sand.u32 1, %s3078_s27   ;;  %s488_s15 = scalar_lea.vmem [#allocation5], %s3273_s24 }
  0xb6   : > { %s485_s28 = scalar_lea.sflag [#allocation6], %s484_s21 }
  0xb7   : > { %2935 = dma.done.wait (%p3624_p12), %s485_s28, 256  }
  0xb8   : > { %2937 = vsyncadd (%p3624_p12), %s485_s28, 4294967040  ;;  %s497_s25 = scalar_lea.vmem [#allocation7], %s3273_s24  ;;  %p3625_p13 = scmp.eq.s32.totalorder %s3078_s27, 0 }
  0xba   : > { %2939 = dma.done.wait (%p3625_p13), [#allocation9], 1024   ;;  %p3626_p6 = pmov %p3625_p13 }
  0xbc   : > { %2941 = vsyncadd (%p3626_p6), [#allocation9], 4294966272  ;;  %p3627_p9 = pmov %p3626_p6 }
  0xbd   : > { %p3628_p2 = pmov %p3626_p6 }
  0xbe   : > { %2943 = dma.done.wait (%p3627_p9), [#allocation12], 1024  }
  0xbf   : > { %2945 = vsyncadd (%p3628_p2), [#allocation12], 4294966272  ;;  %v2979_v0 = vmov 0.0   ;;  %vm2980_vm0 = vmmov 0   ;;  %v659_v1 = vld [vmem:[#allocation10 + $0x18] sm:$0xff]  ;;  %v658_v3 = vld [vmem:[#allocation10 + $0x10] sm:$0xff]  ;;  %v840_v26 = vlaneseq }
  0xc0   : > { %2470 = vmatprep.subr.mxu1 %v2979_v0  ;;  %2459 = vmatprep.subr.mxu0 %v2979_v0  ;;  %v573_v2 = vld [vmem:[#allocation8 + $0x18] sm:$0xff]  ;;  %v572_v4 = vld [vmem:[#allocation8 + $0x10] sm:$0xff]  ;;  %v657_v5 = vld [vmem:[#allocation10 + $0x8] sm:$0xff]  ;;  %vm581_vm1 = vcmask 261120   ;;  %s2981_s3 = smov 104   ;;  %s2982_s16 = smov 120  }
  0xc1   : > { %2478 = vmatprep.mubr.msk.f32.mxu1 %vm2980_vm0, %v2979_v0  ;;  %2467 = vmatprep.mubr.msk.f32.mxu0 %vm2980_vm0, %v2979_v0  ;;  %v571_v6 = vld [vmem:[#allocation8 + $0x8] sm:$0xff]  ;;  %v656_v7 = vld [vmem:[#allocation10] sm:$0xff]  ;;  %v569_v10 = vld [vmem:[%s479_s1] sm:$0xff]  ;;  %s2983_s10 = smov 112   ;;  %v2984_v24 = vmov 1983009808  }
  0xc2   : > { %2471 = vmatpush3.msra.mxu1 %v659_v1  ;;  %2460 = vmatpush3.msra.mxu0 %v573_v2  ;;  %v570_v8 = vld [vmem:[#allocation8] sm:$0xff]  ;;  %v2389_v11 = vld [vmem:[%s3565_s6] ss:$0 sm:$0xff]  ;;  %v744_v19 = vld [vmem:[#allocation11 + $0x18] sm:$0xff]  ;;  %v838_v25 = vunpack.c.l.s4 %v2984_v24  ;;  %v2985_v27 = vmov 1934713408  }
  0xc3   : > { %2472 = vmatprep.subr.mxu1 %v2979_v0  ;;  %2461 = vmatprep.subr.mxu0 %v2979_v0  ;;  %v655_v9 = vld [vmem:[%s488_s15] sm:$0xff]  ;;  %v2387_v13 = vld [vmem:[%s3563_s4] ss:$0 sm:$0xff]  ;;  %v870_v28 = vunpack.c.l.s4 %v2985_v27  ;;  %v841_v30 = vshrl.u32 %v840_v26, 7  ;;  %vm1263_vm2 = vcmask 64512   ;;  %s2386_s14 = sshll.u32 %s3270_s0, 5 }
  0xc4   : > { %2473 = vmatpush3.msra.mxu1 %v658_v3  ;;  %2462 = vmatpush3.msra.mxu0 %v572_v4  ;;  %v743_v20 = vld [vmem:[#allocation11 + $0x10] sm:$0xff]  ;;  %v742_v21 = vld [vmem:[#allocation11 + $0x8] sm:$0xff]  ;;  %v741_v22 = vld [vmem:[#allocation11] sm:$0xff]  ;;  %v839_v29 = vunpack.c.0.s8 %v838_v25  ;;  %s3419_s17 = scalar_lea.vmem [#allocation15], %s2386_s14  ;;  %s2986_s30 = smov 16   ;;  %vm2053_vm3 = vcmask 130048  }
  0xc5   : > { %2474 = vmatprep.subr.mxu1 %v2979_v0  ;;  %2463 = vmatprep.subr.mxu0 %v2979_v0  ;;  %v740_v23 = vld [vmem:[%s497_s25] sm:$0xff]  ;;  %v871_v33 = vunpack.c.0.s8 %v870_v28  ;;  %s2987_s29 = smov 8   ;;  %s2988_s26 = smov 24   ;;  %vm2055_vm4 = vcmask 195584  }
  0xc6   : > { %2475 = vmatpush3.msra.mxu1 %v657_v5  ;;  %2464 = vmatpush3.msra.mxu0 %v571_v6  ;;  %v3346_v34 = vsub.s32 %v839_v29, %v841_v30  ;;  %s2422_s1 = sshll.u32 %s3078_s27, 9  ;;  %s2178_s21 = sshll.u32 %s3419_s17, 4  ;;  %s3487_s21 = int_to_ptr.vmem [resolvable:$true] %s2178_s21 }
  0xc7   : > { %2476 = vmatprep.subr.mxu1 %v2979_v0  ;;  %2465 = vmatprep.subr.mxu0 %v2979_v0  ;;  %v3348_v41 = vsub.s32 %v871_v33, %v841_v30  ;;  %s3629_s25 = sld [smem:[#allocation34_spill]]  ;;  %s2152_s11 = scalar_lea.sflag [#allocation16], %s3270_s0 }
  0xc8   : > { %2477 = vmatpush3.msra.mxu1 %v656_v7  ;;  %2466 = vmatpush3.msra.mxu0 %v570_v8  ;;  %s2862_s12 = scalar_lea.vmem %s3487_s21, 512  ;;  %p3630_p1 = scmp.ne.s32.totalorder %s3609_s20, 0 }
  0xc9   : > { %2479 = vmatmul.mubr.msk.f32.vlgmr.msra.gmra.mxu1 %vm581_vm1, %v655_v9  ;;  %2468 = vmatmul.mubr.msk.f32.vlgmr.msra.gmra.mxu0 %vm581_vm1, %v569_v10  ;;  %p2863_p5 = scmp.ne.s32.totalorder %s3487_s21, %s2862_s12  ;;  %s2989_s18 = smov [#allocation15]  }
  0xca   : > { %2492 = vmatprep.subr.mxu1 %v2979_v0  ;;  %2494 = vmatprep.mubr.msk.f32.mxu1 %vm2980_vm0, %v2979_v0 }
  0xcb   : > { %2481 = vmatprep.subr.mxu0 %v2979_v0  ;;  %2489 = vmatprep.mubr.msk.f32.mxu0 %vm2980_vm0, %v2979_v0  ;;  %p2864_p8 = pnand %p2863_p5, %p3630_p1 }
  0xcc   : > { %2482 = vmatpush3.msra.mxu0 %v744_v19 }
  0xcd   : > { %2483 = vmatprep.subr.mxu0 %v2979_v0  ;;  %s3485_s19 = scalar_lea.hbm %s3629_s25, %s2422_s1  ;;  %p2865_p10 = pneg %p2864_p8 }
  0xce   : > { %2484 = vmatpush3.msra.mxu0 %v743_v20 }
  0xcf   : > { %2485 = vmatprep.subr.mxu0 %v2979_v0 }
  0xd0   : > { %2486 = vmatpush3.msra.mxu0 %v742_v21 }
  0xd1   : > { %2487 = vmatprep.subr.mxu0 %v2979_v0 }
  0xd2   : > { %2488 = vmatpush3.msra.mxu0 %v741_v22 }
  0xd3   : > { %2490 = vmatmul.mubr.msk.f32.vlgmr.msra.gmra.mxu0 %vm581_vm1, %v740_v23  ;;  %2512 = vmatprep.subr.mxu0 %v2979_v0 }
  0xd4   : > { %2514 = vmatprep.mubr.msk.f32.mxu0 %vm2980_vm0, %v2979_v0 }
 0x189   : > { %v736_v12 = vpop.f32.mrf.mxu1  ;;  %v651_v14 = vpop.f32.mrf.mxu0 }
 0x18a   : > { %v737_v15 = vadd.f32 %v2389_v11, %v736_v12  ;;  %v3326_v18 = vadd.f32 %v2387_v13, %v651_v14 }
 0x18b   : > { %v2480_v16 = vpop.f32.mrf.mxu1  ;;  %v2469_v17 = vpop.f32.mrf.mxu0 }
 0x18c   : > { %978 = vrot.lane.b32.xlu1 %v737_v15, %s2981_s3  ;;  %972 = vrot.lane.b32.xlu0 %v737_v15, %s2982_s16 }
 0x190   : > { %975 = vrot.lane.b32.xlu0 %v737_v15, %s2983_s10  ;;  %826 = vrot.lane.b32.xlu1 %v3326_v18, %s2982_s16 }
 0x194   : > { %829 = vrot.lane.b32.xlu0 %v3326_v18, %s2983_s10  ;;  %832 = vrot.lane.b32.xlu1 %v3326_v18, %s2981_s3 }
 0x1fe   : > { %v979_v31 = vpop.permute.xlu1 %978  ;;  %v973_v32 = vpop.permute.xlu0 %972 }
 0x1ff   : > { %v997_v35 = vcombine.low %v973_v32, %v979_v31  ;;  %v998_v36 = vcombine.high %v973_v32, %v979_v31 }
 0x201   : > { %v1005_v42 = vrot.slane %v997_v35, %v3346_v34  ;;  %v1012_v43 = vrot.slane %v998_v36, %v3346_v34 }
 0x202   : > { %v976_v37 = vpop.permute.xlu0 %975  ;;  %v827_v38 = vpop.permute.xlu1 %826 }
 0x203   : > { %v981_v39 = vcombine.low %v737_v15, %v976_v37  ;;  %v982_v40 = vcombine.high %v737_v15, %v976_v37 }
 0x205   : > { %v989_v44 = vrot.slane %v981_v39, %v3346_v34  ;;  %v996_v45 = vrot.slane %v982_v40, %v3346_v34 }
 0x206   : > { %v830_v46 = vpop.permute.xlu0 %829  ;;  %v833_v47 = vpop.permute.xlu1 %832 }
 0x207   : > { %v1013_v48 = vcombine.low %v989_v44, %v1005_v42  ;;  %v1014_v49 = vcombine.high %v989_v44, %v1005_v42  ;;  %v1029_v50 = vcombine.low %v996_v45, %v1012_v43  ;;  %v1030_v51 = vcombine.high %v996_v45, %v1012_v43 }
 0x208   : > { %v835_v52 = vcombine.low %v3326_v18, %v830_v46  ;;  %v836_v53 = vcombine.high %v3326_v18, %v830_v46  ;;  %v851_v54 = vcombine.low %v827_v38, %v833_v47  ;;  %v852_v55 = vcombine.high %v827_v38, %v833_v47 }
 0x209   : > { %v1021_v56 = vrot.slane %v1013_v48, %v3348_v41  ;;  %v1028_v57 = vrot.slane %v1014_v49, %v3348_v41  ;;  %v1037_v58 = vrot.slane %v1029_v50, %v3348_v41  ;;  %v1044_v59 = vrot.slane %v1030_v51, %v3348_v41  ;;  %v821_v51 = vpop.f32.mrf.mxu0 }
 0x20a   : > { %v843_v60 = vrot.slane %v835_v52, %v3346_v34  ;;  %v850_v61 = vrot.slane %v836_v53, %v3346_v34  ;;  %v859_v62 = vrot.slane %v851_v54, %v3346_v34  ;;  %v866_v63 = vrot.slane %v852_v55, %v3346_v34 }
 0x20b   : > { %v1049_v1 = vcombine.low %v1021_v56, %v1028_v57  ;;  %v2395_v2 = vcombine.high %v1021_v56, %v1028_v57  ;;  %v1065_v3 = vcombine.low %v1037_v58, %v1044_v59  ;;  %v2396_v4 = vcombine.high %v1037_v58, %v1044_v59  ;;  %v2491_v52 = vpop.f32.mrf.mxu0 }
 0x20c   : > { %v867_v5 = vcombine.low %v843_v60, %v859_v62  ;;  %v868_v6 = vcombine.high %v843_v60, %v859_v62  ;;  %v883_v7 = vcombine.low %v850_v61, %v866_v63  ;;  %v884_v8 = vcombine.high %v850_v61, %v866_v63 }
 0x20d   : > { %v1056_v9 = vrot.slane %v1049_v1, %v3346_v34  ;;  %v1064_v10 = vrot.slane %v2395_v2, %v3346_v34  ;;  %v1072_v11 = vrot.slane %v1065_v3, %v3346_v34  ;;  %v1080_v12 = vrot.slane %v2396_v4, %v3346_v34  ;;  %v2391_v2 = vld [vmem:[%s3567_s8] ss:$0 sm:$0xff] }
 0x20e   : > { %v875_v13 = vrot.slane %v867_v5, %v3348_v41  ;;  %v882_v14 = vrot.slane %v868_v6, %v3348_v41  ;;  %v891_v15 = vrot.slane %v883_v7, %v3348_v41  ;;  %v898_v16 = vrot.slane %v884_v8, %v3348_v41 }
 0x20f   : > { %v1081_v17 = vcombine.low %v1056_v9, %v1064_v10  ;;  %v1097_v18 = vcombine.low %v1072_v11, %v1080_v12  ;;  %v1082_v32 = vcombine.high %v1056_v9, %v1064_v10  ;;  %v1098_v33 = vcombine.high %v1072_v11, %v1080_v12 }
 0x210   : > { %v903_v19 = vcombine.low %v875_v13, %v882_v14  ;;  %v2393_v20 = vcombine.high %v875_v13, %v882_v14  ;;  %v919_v21 = vcombine.low %v891_v15, %v898_v16  ;;  %v2394_v22 = vcombine.high %v891_v15, %v898_v16 }
 0x211   : > { %v1089_v23 = vrot.slane %v1081_v17, %v3348_v41  ;;  %v1105_v24 = vrot.slane %v1097_v18, %v3348_v41  ;;  %v1096_v42 = vrot.slane %v1082_v32, %v3348_v41  ;;  %v1112_v43 = vrot.slane %v1098_v33, %v3348_v41 }
 0x212   : > { %v910_v25 = vrot.slane %v903_v19, %v3346_v34  ;;  %v918_v26 = vrot.slane %v2393_v20, %v3346_v34  ;;  %v926_v27 = vrot.slane %v919_v21, %v3346_v34  ;;  %v934_v28 = vrot.slane %v2394_v22, %v3346_v34 }
 0x213   : > { %v1113_v29 = vcombine.low %v1089_v23, %v1105_v24  ;;  %v1114_v40 = vcombine.high %v1089_v23, %v1105_v24  ;;  %v1115_v47 = vcombine.low %v1096_v42, %v1112_v43  ;;  %v1116_v49 = vcombine.high %v1096_v42, %v1112_v43 }
 0x214   : > { %v935_v30 = vcombine.low %v910_v25, %v918_v26  ;;  %v951_v31 = vcombine.low %v926_v27, %v934_v28  ;;  %v936_v37 = vcombine.high %v910_v25, %v918_v26  ;;  %v952_v38 = vcombine.high %v926_v27, %v934_v28 }
 0x215   : > { %2493 = vmatpush3.xpose.msk.msra.mxu1 %vm1263_vm2, %v1113_v29  ;;  %v822_v3 = vadd.f32 %v2391_v2, %v821_v51 }
 0x216   : > { %2497 = vmatprep.subr.mxu1 %v2979_v0  ;;  %v943_v35 = vrot.slane %v935_v30, %v3348_v41  ;;  %v959_v36 = vrot.slane %v951_v31, %v3348_v41  ;;  %v950_v45 = vrot.slane %v936_v37, %v3348_v41  ;;  %v966_v46 = vrot.slane %v952_v38, %v3348_v41 }
 0x218   : > { %v967_v39 = vcombine.low %v943_v35, %v959_v36  ;;  %v968_v44 = vcombine.high %v943_v35, %v959_v36  ;;  %v969_v48 = vcombine.low %v950_v45, %v966_v46  ;;  %v970_v50 = vcombine.high %v950_v45, %v966_v46 }
 0x21a   : > { %2495 = vmatmul.mubr.msk.f32.vlgmr.msra.gmra.mxu1 %vm1263_vm2, %v967_v39 }
 0x21b   : > { %2498 = vmatpush3.xpose.msk.msra.mxu1 %vm1263_vm2, %v1114_v40  ;;  %2499 = vmatprep.mubr.msk.f32.mxu1 %vm2980_vm0, %v2979_v0 }
 0x21c   : > { %2502 = vmatprep.subr.mxu1 %v2979_v0 }
 0x21e   : > { %2500 = vmatmul.mubr.msk.f32.vlgmr.msra.gmra.mxu1 %vm1263_vm2, %v968_v44 }
 0x21f   : > { %2503 = vmatpush3.xpose.msk.msra.mxu1 %vm1263_vm2, %v1115_v47  ;;  %2504 = vmatprep.mubr.msk.f32.mxu1 %vm2980_vm0, %v2979_v0 }
 0x220   : > { %2507 = vmatprep.subr.mxu1 %v2979_v0 }
 0x222   : > { %2505 = vmatmul.mubr.msk.f32.vlgmr.msra.gmra.mxu1 %vm1263_vm2, %v969_v48 }
 0x223   : > { %2508 = vmatpush3.xpose.msk.msra.mxu1 %vm1263_vm2, %v1116_v49  ;;  %2509 = vmatprep.mubr.msk.f32.mxu1 %vm2980_vm0, %v2979_v0 }
 0x224   : > { %2517 = vmatprep.subr.mxu1 %v2979_v0 }
 0x226   : > { %2510 = vmatmul.mubr.msk.f32.vlgmr.msra.gmra.mxu1 %vm1263_vm2, %v970_v50 }
 0x227   : > { %2519 = vmatprep.mubr.msk.f32.mxu1 %vm2980_vm0, %v2979_v0 }
 0x2da   : > { %v1336_v53 = vpop.f32.mrf.mxu1 }
 0x2db   : > { %v1568_v54 = vsel %vm1263_vm2, %v1336_v53, -inf }
 0x2dc   : > { %1569 = vmax.xlane.f32.xlu0 %v1568_v54  ;;  %v2496_v55 = vpop.f32.mrf.mxu1 }
 0x2de   : > { %v1412_v56 = vpop.f32.mrf.mxu1 }
 0x2df   : > { %v1571_v57 = vsel %vm1263_vm2, %v1412_v56, -inf }
 0x2e0   : > { %1572 = vmax.xlane.f32.xlu1 %v1571_v57  ;;  %v2501_v58 = vpop.f32.mrf.mxu1 }
 0x2e2   : > { %v1488_v59 = vpop.f32.mrf.mxu1 }
 0x2e3   : > { %v1574_v60 = vsel %vm1263_vm2, %v1488_v59, -inf }
 0x2e4   : > { %1575 = vmax.xlane.f32.xlu0 %v1574_v60  ;;  %v2506_v61 = vpop.f32.mrf.mxu1 }
 0x2e6   : > { %v1564_v62 = vpop.f32.mrf.mxu1 }
 0x2e7   : > { %v1577_v63 = vsel %vm1263_vm2, %v1564_v62, -inf }
 0x2e8   : > { %1578 = vmax.xlane.f32.xlu0 %v1577_v63  ;;  %v2511_v1 = vpop.f32.mrf.mxu1 }
 0x2f1   : > { %1118 = vrot.lane.b32.xlu1 %v822_v3, %s2982_s16 }
 0x365   : > { %v1570_v4 = vpop.xlane.xlu0 %1569 }
 0x366   : > { %v1580_v5 = vsub.f32 %v1336_v53, %v1570_v4 }
 0x368   : > { %v1584_v6 = vmul.f32 1.442695, %v1580_v5 }
 0x369   : > { %v1573_v7 = vpop.xlane.xlu1 %1572 }
 0x36a   : > { %2658 = vpow2.f32 %v1584_v6  ;;  %v1581_v8 = vsub.f32 %v1412_v56, %v1573_v7 }
 0x36c   : > { %v1586_v9 = vmul.f32 1.442695, %v1581_v8 }
 0x36d   : > { %v1576_v10 = vpop.xlane.xlu0 %1575  ;;  %v1119_v24 = vpop.permute.xlu1 %1118 }
 0x36e   : > { %2660 = vpow2.f32 %v1586_v9  ;;  %v1582_v11 = vsub.f32 %v1488_v59, %v1576_v10 }
 0x370   : > { %v1588_v12 = vmul.f32 1.442695, %v1582_v11 }
 0x371   : > { %v1579_v13 = vpop.xlane.xlu0 %1578 }
 0x372   : > { %2662 = vpow2.f32 %v1588_v12  ;;  %v1583_v14 = vsub.f32 %v1564_v62, %v1579_v13 }
 0x374   : > { %v1590_v15 = vmul.f32 1.442695, %v1583_v14  ;;  %v2060_v14 = vld [vmem:[#allocation13 + $0x18] sm:$0xff] }
 0x376   : > { %2664 = vpow2.f32 %v1590_v15 }
 0x377   : > { %v2659_v16 = vpop.eup %2658 }
 0x378   : > { %v1592_v17 = vsel %vm1263_vm2, %v2659_v16, 0.0 }
 0x379   : > { %1593 = vadd.xlane.f32.xlu1 %v1592_v17 }
 0x37b   : > { %v2661_v18 = vpop.eup %2660 }
 0x37c   : > { %v1595_v19 = vsel %vm1263_vm2, %v2661_v18, 0.0 }
 0x37d   : > { %1596 = vadd.xlane.f32.xlu0 %v1595_v19 }
 0x37f   : > { %v2663_v20 = vpop.eup %2662 }
 0x380   : > { %v1598_v21 = vsel %vm1263_vm2, %v2663_v20, 0.0 }
 0x381   : > { %1599 = vadd.xlane.f32.xlu1 %v1598_v21 }
 0x383   : > { %v2665_v22 = vpop.eup %2664 }
 0x384   : > { %v1601_v23 = vsel %vm1263_vm2, %v2665_v22, 0.0 }
 0x385   : > { %1602 = vadd.xlane.f32.xlu0 %v1601_v23 }
 0x392   : > { %1124 = vrot.lane.b32.xlu1 %v822_v3, %s2981_s3  ;;  %s2866_s3 = sshll.u32 %s2989_s18, 4  ;;  %s2867_s3 = int_to_ptr.vmem [resolvable:$false] %s2866_s3 }
 0x393   : > { %s2868_s16 = scalar_lea.vmem %s2867_s3, 1024  ;;  %p2869_p11 = scmp.lt.s32.totalorder %s3487_s21, %s2867_s3 }
 0x394   : > { %p2870_p0 = scmp.lt.s32.totalorder %s2868_s16, %s2862_s12 }
 0x396   : > { %p2871_p4 = por %p2870_p0, %p2869_p11 }
 0x398   : > { %p2872_p7 = pnand %p2871_p4, %p2865_p10 }
 0x39b   : > { %1121 = vrot.lane.b32.xlu0 %v822_v3, %s2983_s10 }
 0x402   : > { %v1594_v25 = vpop.xlane.xlu1 %1593 }
 0x403   : > { %2666 = vrcp.f32 %v1594_v25 }
 0x406   : > { %v1597_v26 = vpop.xlane.xlu0 %1596 }
 0x407   : > { %2668 = vrcp.f32 %v1597_v26 }
 0x40a   : > { %v1600_v27 = vpop.xlane.xlu1 %1599 }
 0x40b   : > { %2670 = vrcp.f32 %v1600_v27 }
 0x40e   : > { %v1603_v28 = vpop.xlane.xlu0 %1602  ;;  %v1125_v29 = vpop.permute.xlu1 %1124 }
 0x40f   : > { %2672 = vrcp.f32 %v1603_v28  ;;  %v1143_v31 = vcombine.low %v1119_v24, %v1125_v29  ;;  %v1144_v32 = vcombine.high %v1119_v24, %v1125_v29 }
 0x410   : > { %v2667_v30 = vpop.eup %2666 }
 0x411   : > { %v1608_v33 = vmul.f32 %v2667_v30, %v2659_v16  ;;  %v1151_v39 = vrot.slane %v1143_v31, %v3346_v34  ;;  %v1158_v40 = vrot.slane %v1144_v32, %v3346_v34 }
 0x412   : > { %v1122_v35 = vpop.permute.xlu0 %1121 }
 0x413   : > { %v1127_v36 = vcombine.low %v822_v3, %v1122_v35  ;;  %v1128_v37 = vcombine.high %v822_v3, %v1122_v35  ;;  %2142 = vst.msk [vmem:[%s3419_s17] sm:$0xff] %vm1263_vm2, %v1608_v33 }
 0x414   : > { %v2669_v38 = vpop.eup %2668 }
 0x415   : > { %v1135_v42 = vrot.slane %v1127_v36, %v3346_v34  ;;  %v1142_v43 = vrot.slane %v1128_v37, %v3346_v34  ;;  %v1609_v44 = vmul.f32 %v2669_v38, %v2661_v18  ;;  %v2059_v36 = vld [vmem:[#allocation13 + $0x10] sm:$0xff]  ;;  %v2058_v37 = vld [vmem:[#allocation13 + $0x8] sm:$0xff] }
 0x417   : > { %v1159_v45 = vcombine.low %v1135_v42, %v1151_v39  ;;  %v1160_v46 = vcombine.high %v1135_v42, %v1151_v39  ;;  %v1175_v47 = vcombine.low %v1142_v43, %v1158_v40  ;;  %v1176_v48 = vcombine.high %v1142_v43, %v1158_v40  ;;  %2143 = vst.msk [vmem:[%s3419_s17 + $0x8] sm:$0xff] %vm1263_vm2, %v1609_v44 }
 0x418   : > { %v2671_v49 = vpop.eup %2670 }
 0x419   : > { %v1167_v50 = vrot.slane %v1159_v45, %v3348_v41  ;;  %v1174_v51 = vrot.slane %v1160_v46, %v3348_v41  ;;  %v1183_v52 = vrot.slane %v1175_v47, %v3348_v41  ;;  %v1190_v53 = vrot.slane %v1176_v48, %v3348_v41  ;;  %v2057_v47 = vld [vmem:[#allocation13] sm:$0xff] }
 0x41a   : > { %v1610_v54 = vmul.f32 %v2671_v49, %v2663_v20 }
 0x41b   : > { %v1195_v55 = vcombine.low %v1167_v50, %v1174_v51  ;;  %v2397_v56 = vcombine.high %v1167_v50, %v1174_v51  ;;  %v1211_v57 = vcombine.low %v1183_v52, %v1190_v53  ;;  %v2398_v58 = vcombine.high %v1183_v52, %v1190_v53 }
 0x41c   : > { %v2673_v59 = vpop.eup %2672  ;;  %2144 = vst.msk [vmem:[%s3419_s17 + $0x10] sm:$0xff] %vm1263_vm2, %v1610_v54 }
 0x41d   : > { %v1202_v60 = vrot.slane %v1195_v55, %v3346_v34  ;;  %v1210_v61 = vrot.slane %v2397_v56, %v3346_v34  ;;  %v1218_v62 = vrot.slane %v1211_v57, %v3346_v34  ;;  %v1226_v63 = vrot.slane %v2398_v58, %v3346_v34 }
 0x41e   : > { %v1611_v1 = vmul.f32 %v2673_v59, %v2665_v22 }
 0x41f   : > { %v1227_v2 = vcombine.low %v1202_v60, %v1210_v61  ;;  %v1243_v3 = vcombine.low %v1218_v62, %v1226_v63  ;;  %v1228_v4 = vcombine.high %v1202_v60, %v1210_v61  ;;  %v1244_v5 = vcombine.high %v1218_v62, %v1226_v63 }
 0x420   : > { %2145 = vst.msk [vmem:[%s3419_s17 + $0x18] sm:$0xff] %vm1263_vm2, %v1611_v1 }
 0x421   : > { %v1235_v6 = vrot.slane %v1227_v2, %v3348_v41  ;;  %v1251_v7 = vrot.slane %v1243_v3, %v3348_v41  ;;  %v1242_v8 = vrot.slane %v1228_v4, %v3348_v41  ;;  %v1258_v9 = vrot.slane %v1244_v5, %v3348_v41 }
 0x423   : > { %v1259_v10 = vcombine.low %v1235_v6, %v1251_v7  ;;  %v1260_v11 = vcombine.high %v1235_v6, %v1251_v7  ;;  %v1261_v12 = vcombine.low %v1242_v8, %v1258_v9  ;;  %v1262_v13 = vcombine.high %v1242_v8, %v1258_v9 }
 0x425   : > { %2513 = vmatpush3.msra.mxu0 %v1259_v10  ;;  %2518 = vmatpush3.msra.mxu1 %v1260_v11 }
 0x426   : > { %2515 = vmatmul.mubr.msk.f32.vlgmr.msra.gmra.mxu0 %vm1263_vm2, %v1608_v33  ;;  %2520 = vmatmul.mubr.msk.f32.vlgmr.msra.gmra.mxu1 %vm1263_vm2, %v1609_v44 }
 0x427   : > { %2522 = vmatprep.subr.mxu0 %v2979_v0  ;;  %2527 = vmatprep.subr.mxu1 %v2979_v0 }
 0x428   : > { %2523 = vmatpush3.msra.mxu0 %v1261_v12  ;;  %2528 = vmatpush3.msra.mxu1 %v1262_v13 }
 0x429   : > { %2524 = vmatprep.mubr.msk.f32.mxu0 %vm2980_vm0, %v2979_v0  ;;  %2529 = vmatprep.mubr.msk.f32.mxu1 %vm2980_vm0, %v2979_v0 }
 0x42a   : > { %2525 = vmatmul.mubr.msk.f32.vlgmr.msra.gmra.mxu0 %vm1263_vm2, %v1610_v54  ;;  %2530 = vmatmul.mubr.msk.f32.vlgmr.msra.gmra.mxu1 %vm1263_vm2, %v1611_v1 }
 0x42b   : > { %2532 = vmatprep.subr.mxu0 %v2979_v0  ;;  %2540 = vmatprep.mubr.msk.f32.mxu0 %vm2980_vm0, %v2979_v0 }
 0x42c   : > { %2533 = vmatpush3.msra.mxu0 %v2060_v14 }
 0x42d   : > { %2534 = vmatprep.subr.mxu0 %v2979_v0 }
 0x42e   : > { %2535 = vmatpush3.msra.mxu0 %v2059_v36 }
 0x42f   : > { %2536 = vmatprep.subr.mxu0 %v2979_v0 }
 0x430   : > { %2537 = vmatpush3.msra.mxu0 %v2058_v37 }
 0x431   : > { %2538 = vmatprep.subr.mxu0 %v2979_v0 }
 0x432   : > { %2539 = vmatpush3.msra.mxu0 %v2057_v47 }
 0x4e6   : > { %v1681_v15 = vpop.f32.mrf.mxu0  ;;  %v1754_v16 = vpop.f32.mrf.mxu1 }
 0x4e8   : > { %v2516_v17 = vpop.f32.mrf.mxu0  ;;  %v2521_v18 = vpop.f32.mrf.mxu1 }
 0x4ea   : > { %v1827_v19 = vpop.f32.mrf.mxu0  ;;  %v1900_v20 = vpop.f32.mrf.mxu1 }
 0x4eb   : > { %v1904_v21 = vcombine.low %v1681_v15, %v1827_v19  ;;  %v1905_v22 = vcombine.high %v1681_v15, %v1827_v19  ;;  %v1920_v23 = vcombine.low %v1754_v16, %v1900_v20  ;;  %v1921_v24 = vcombine.high %v1754_v16, %v1900_v20 }
 0x4ec   : > { %v2526_v25 = vpop.f32.mrf.mxu0  ;;  %v2531_v26 = vpop.f32.mrf.mxu1 }
 0x4ed   : > { %v1912_v27 = vrot.slane %v1904_v21, %v3346_v34  ;;  %v1919_v28 = vrot.slane %v1905_v22, %v3346_v34  ;;  %v1928_v29 = vrot.slane %v1920_v23, %v3346_v34  ;;  %v1935_v30 = vrot.slane %v1921_v24, %v3346_v34 }
 0x4ef   : > { %v1936_v31 = vcombine.low %v1912_v27, %v1928_v29  ;;  %v1937_v32 = vcombine.high %v1912_v27, %v1928_v29  ;;  %v1952_v33 = vcombine.low %v1919_v28, %v1935_v30  ;;  %v1953_v35 = vcombine.high %v1919_v28, %v1935_v30 }
 0x4f1   : > { %v1944_v38 = vrot.slane %v1936_v31, %v3348_v41  ;;  %v1951_v39 = vrot.slane %v1937_v32, %v3348_v41  ;;  %v1960_v40 = vrot.slane %v1952_v33, %v3348_v41  ;;  %v1967_v42 = vrot.slane %v1953_v35, %v3348_v41 }
 0x4f3   : > { %v1972_v43 = vcombine.low %v1944_v38, %v1951_v39  ;;  %v2411_v44 = vcombine.high %v1944_v38, %v1951_v39  ;;  %v1988_v45 = vcombine.low %v1960_v40, %v1967_v42  ;;  %v2412_v46 = vcombine.high %v1960_v40, %v1967_v42 }
 0x4f5   : > { %v1979_v48 = vrot.slane %v1972_v43, %v3346_v34  ;;  %v1987_v49 = vrot.slane %v2411_v44, %v3346_v34  ;;  %v1995_v50 = vrot.slane %v1988_v45, %v3346_v34  ;;  %v2003_v51 = vrot.slane %v2412_v46, %v3346_v34 }
 0x4f7   : > { %v2005_v52 = vcombine.high %v1979_v48, %v1987_v49  ;;  %v2021_v53 = vcombine.high %v1995_v50, %v2003_v51  ;;  %v2004_v54 = vcombine.low %v1979_v48, %v1987_v49  ;;  %v2020_v55 = vcombine.low %v1995_v50, %v2003_v51 }
 0x4f9   : > { %v2019_v56 = vrot.slane %v2005_v52, %v3348_v41  ;;  %v2035_v57 = vrot.slane %v2021_v53, %v3348_v41  ;;  %v2012_v0 = vrot.slane %v2004_v54, %v3348_v41  ;;  %v2028_v58 = vrot.slane %v2020_v55, %v3348_v41 }
 0x4fb   : > { %v2038_v59 = vcombine.low %v2019_v56, %v2035_v57  ;;  %v2037_v60 = vcombine.high %v2012_v0, %v2028_v58  ;;  %v2036_v61 = vcombine.low %v2012_v0, %v2028_v58  ;;  %v2039_v34 = vcombine.high %v2019_v56, %v2035_v57 }
 0x4fd   : > { %2045 = vrot.lane.b32.xlu0 %v2038_v59, %s2986_s30  ;;  %2041 = vrot.lane.b32.xlu1 %v2037_v60, %s2987_s29 }
 0x501   : > { %2049 = vrot.lane.b32.xlu1 %v2039_v34, %s2988_s26 }
 0x56f   : > { %v2042_v62 = vpop.permute.xlu1 %2041  ;;  %v2046_v63 = vpop.permute.xlu0 %2045 }
 0x570   : > { %v2052_v1 = vsel %vm1263_vm2, %v2036_v61, %v2042_v62 }
 0x571   : > { %v2054_v2 = vsel %vm2053_vm3, %v2052_v1, %v2046_v63 }
 0x573   : > { %v2050_v41 = vpop.permute.xlu1 %2049 }
 0x574   : > { %v2056_v3 = vsel %vm2055_vm4, %v2054_v2, %v2050_v41 }
 0x575   : > { %2541 = vmatmul.mubr.msk.f32.vlgmr.msra.gmra.mxu0 %vm581_vm1, %v2056_v3 }
 0x576   : > { %2875 = shalt.err (!%p2872_p7)
}
 0x577   : > { %s2876_s10 = scalar_lea.hbm %s3485_s19, 512  ;;  %s2880_s14 = scalar_lea.hbm %s3629_s25, 1024 }
 0x578   : > { %p2877_p3 = scmp.ne.s32.totalorder %s3485_s19, %s2876_s10  ;;  %p2881_p6 = scmp.lt.s32.totalorder %s3485_s19, %s3629_s25 }
 0x579   : > { %p2882_p9 = scmp.lt.s32.totalorder %s2880_s14, %s2876_s10 }
 0x57a   : > { %p2878_p12 = pnand %p2877_p3, %p3630_p1 }
 0x57b   : > { %p2883_p2 = por %p2882_p9, %p2881_p6 }
 0x57c   : > { %p2879_p13 = pneg %p2878_p12 }
 0x57e   : > { %p2884_p5 = pnand %p2883_p2, %p2879_p13 }
 0x580   : > { %2887 = shalt.err (!%p2884_p5)
}
 0x581   : > { %s2990_s26 = smov 128   ;;  %s3631_s15 = sld [smem:[#allocation32_spill]] }
 0x582   : > { %2566 = dma.vmem_to_hbm [thread:$0]  (%p3630_p1), %s3487_s21, 512, %s3485_s19, %s2152_s11, %s2990_s26, %s2990_s26, %s2987_s29  }
 0x583   : > { %s2417_s12 = sshll.u32 %s3078_s27, 7  ;;  %s561_s18 = scalar_lea.vmem [#allocation14], %s3273_s24 }
 0x584   : > { %s2165_s3 = sshll.u32 %s561_s18, 4  ;;  %s3632_s13 = sld [smem:[#allocation33_spill]]  ;;  %s2166_s3 = int_to_ptr.vmem [resolvable:$true] %s2165_s3 }
 0x585   : > { %s2147_s14 = scalar_lea.sflag [#allocation4], %s3270_s0  ;;  %s2888_s29 = scalar_lea.vmem %s2166_s3, 128 }
 0x586   : > { %p2889_p8 = scmp.ne.s32.totalorder %s2166_s3, %s2888_s29  ;;  %s2991_s27 = smov [#allocation14]  }
 0x587   : > { %v2413_v4 = vld [vmem:[%s3631_s15] ss:$0 sm:$0xff]  ;;  %s2892_s24 = sshll.u32 %s2991_s27, 4  ;;  %s2893_s24 = int_to_ptr.vmem [resolvable:$false] %s2892_s24 }
 0x588   : > { %p2890_p10 = pnand %p2889_p8, %p3630_p1  ;;  %s2894_s21 = scalar_lea.vmem %s2893_s24, 256 }
 0x589   : > { %p2895_p0 = scmp.lt.s32.totalorder %s2166_s3, %s2893_s24  ;;  %p2896_p4 = scmp.lt.s32.totalorder %s2894_s21, %s2888_s29 }
 0x58a   : > { %s3521_s7 = scalar_lea.hbm %s3632_s13, %s2417_s12  ;;  %p2891_p11 = pneg %p2890_p10 }
 0x58b   : > { %p2897_p7 = por %p2896_p4, %p2895_p0 }
 0x58d   : > { %p2898_p3 = pnand %p2897_p7, %p2891_p11 }
 0x635   : > { %v2137_v5 = vpop.f32.mrf.mxu0 }
 0x636   : > { %v2138_v6 = vadd.f32 %v2413_v4, %v2137_v5 }
 0x637   : > { %v2542_v7 = vpop.f32.mrf.mxu0 }
 0x638   : > { %2141 = vst.msk [vmem:[%s561_s18] sm:$0xff] %vm581_vm1, %v2138_v6 }
 0x639   : > { %2901 = shalt.err (!%p2898_p3)
}
 0x63a   : > { %s2902_s19 = scalar_lea.hbm %s3521_s7, 128  ;;  %s2906_s17 = scalar_lea.hbm %s3632_s13, 256 }
 0x63b   : > { %p2903_p12 = scmp.ne.s32.totalorder %s3521_s7, %s2902_s19  ;;  %p2907_p9 = scmp.lt.s32.totalorder %s3521_s7, %s3632_s13 }
 0x63c   : > { %p2908_p2 = scmp.lt.s32.totalorder %s2906_s17, %s2902_s19 }
 0x63d   : > { %p2904_p13 = pnand %p2903_p12, %p3630_p1 }
 0x63e   : > { %p2909_p5 = por %p2908_p2, %p2907_p9 }
 0x63f   : > { %p2905_p6 = pneg %p2904_p13 }
 0x641   : > { %p2910_p8 = pnand %p2909_p5, %p2905_p6 }
 0x643   : > { %2913 = shalt.err (!%p2910_p8)
}
 0x644   : > { %2565 = dma.vmem_to_hbm [thread:$0]  (%p3630_p1), %s2166_s3, 128, %s3521_s7, %s2147_s14  }
 0x645 PF: > { %s3633_s1 = sld [smem:[#allocation23_spill]] }
 0x646   : > { %s3634_s28 = sld [smem:[#allocation27_spill]] }
 0x647   : > { %s3635_s15 = sld [smem:[#allocation24_spill]] }
 0x64b   : > { %s2193_s12 = sand.u32 1, %s3633_s1  }
 0x64c   : > { %p3636_p10 = scmp.ne.s32.totalorder %s3634_s28, 0  ;;  %s2194_s18 = scalar_lea.sflag [#allocation4], %s2193_s12 }
 0x64d   : > { %p3637_p11 = scmp.ge.s32.totalorder %s3635_s15, 2 }
 0x64f   : > { %p2593_p0 = pnand %p3637_p11, %p3636_p10 }
 0x651   : > { %p2594_p4 = pneg %p2593_p0 }
 0x653   : > { %2947 = dma.done.wait (%p2594_p4), %s2194_s18, 128  }
 0x654   : > { %2949 = vsyncadd (%p2594_p4), %s2194_s18, 4294967168  ;;  %s2203_s16 = scalar_lea.sflag [#allocation16], %s2193_s12 }
 0x655   : > { %2951 = dma.done.wait (%p2594_p4), %s2203_s16, 512  }
 0x656   : > { %2953 = vsyncadd (%p2594_p4), %s2203_s16, 4294966784  ;;  %s3638_s24 = sld [smem:[#allocation25_spill]]  ;;  %s3640_s21 = smov %s2960_s22 }
 0x657   : > { %s3639_s20 = sld [smem:[#allocation26_spill]]  ;;  %s3641_s22 = smov %s2964_s23 }
 0x65c   : > { %p34_p1 = scmp.ge.s32.totalorder %s3638_s24, 4  }
 0x65d   : > { %s3642_s23 = smov %s3639_s20 }
 0x65e   :  { %36 = sbr.rel (!%p34_p1) target bundleno = 19 (0x13), region = 166 }
 0x663   :  { %2208 = vsyncpa [#allocation3], 1 }
 0x664   :  { %2210 = vsyncpa [#allocation3 + $0x1], 1 }
 0x665   :  { %2211 = vsyncpa [#allocation6], 1 }
 0x666   :  { %2213 = vsyncpa [#allocation6 + $0x1], 1 }
 0x667   :  { %2214 = vsyncpa [#allocation9], 1 }
 0x668   :  { %2215 = vsyncpa [#allocation12], 1 }
 0x669   :  { %2216 = vsyncpa [#allocation4], 1 }
 0x66a   :  { %2218 = vsyncpa [#allocation4 + $0x1], 1 }
 0x66b   :  { %2219 = vsyncpa [#allocation16], 1 }
 0x66c   :  { %2221 = vsyncpa [#allocation16 + $0x1], 1 }

</bundles_post_ra>
